<compile_context>
chip_gen: v7x
topology: tpu7x:2x2x1
jax: 0.10.0
libtpu: 0.0.40
codegen_flags: <defaults>
</compile_context>

<pallas_src>
import functools

import numpy as np
import jax
import jax.numpy as jnp
from jax.experimental import pallas as pl
from jax.experimental.pallas import tpu as pltpu


def _round_up(x, m):
    return ((x + m - 1) // m) * m


def _resident_spec(shape):
    """BlockSpec for a grid-invariant operand (weights / biases).

    The block index never changes across the grid, so request single-buffering
    (halves the weight VMEM footprint vs. the default double-buffer).  Falls
    back to a plain BlockSpec if this Pallas version lacks pipeline_mode/Buffered.
    """
    index_map = lambda i: (0, 0)
    try:
        return pl.BlockSpec(shape, index_map, pipeline_mode=pl.Buffered(1))
    except (AttributeError, TypeError):
        return pl.BlockSpec(shape, index_map)


def _mlp_kernel(x_ref, w1_ref, b1_ref, w2_ref, b2_ref, w3_ref, b3_ref, o_ref):
    """Fused 3-layer MLP on one batch tile.

    Matmuls use bf16 (or the stored compute dtype) operands with f32 accumulation
    on the MXU; bias-add + ReLU run in f32 on the VPU, then re-cast for the next
    MXU pass.  Dropout is identity (eval mode).
    """
    x = x_ref[...]

    h1 = jnp.dot(x, w1_ref[...], preferred_element_type=jnp.float32) + b1_ref[...]
    h1 = jnp.maximum(h1, 0.0).astype(w2_ref.dtype)   # ReLU (Dropout -> identity)

    h2 = jnp.dot(h1, w2_ref[...], preferred_element_type=jnp.float32) + b2_ref[...]
    h2 = jnp.maximum(h2, 0.0).astype(w3_ref.dtype)   # ReLU (Dropout -> identity)

    out = jnp.dot(h2, w3_ref[...], preferred_element_type=jnp.float32) + b3_ref[...]
    o_ref[...] = out.astype(o_ref.dtype)


@functools.partial(jax.jit, static_argnames=("max_tile_b", "compute_dtype"))
def latent_feature_encoder(latent_features, params, max_tile_b=256,
                           compute_dtype=jnp.bfloat16):
    """JAX/Pallas equivalent of LatentFeatureEncoder.forward (eval mode).

    latent_features: (B, latent_dim) or (latent_dim,)
    params: dict with w1 (L,H), b1 (1,H), w2 (H,H), b2 (1,H), w3 (H,E), b3 (1,E)
            (weights already transposed to (in, out)); stored in f32, cast to
            `compute_dtype` for the MXU.
    """
    squeeze = latent_features.ndim == 1
    x = latent_features[None, :] if squeeze else latent_features
    out_dtype = x.dtype

    B, L = x.shape
    H = params["w1"].shape[1]
    E = params["w3"].shape[1]

    # Lane-dense padding: all feature (last) dims become multiples of 128 so the
    # matmuls use full lanes and the output store is an unmasked vst.
    Lp = _round_up(L, 128)
    Hp = _round_up(H, 128)
    Ep = _round_up(E, 128)

    # Batch tile: up to max_tile_b rows (multiple of the 256-wide MXU on v6e/v7x,
    # and of 16 for bf16 sublane packing).  For tiny batches collapse to a single
    # grid step so we pay no per-step pipeline overhead and minimal padding.
    tile_b = min(max_tile_b, _round_up(B, 16))
    Bp = _round_up(B, tile_b)
    grid = (Bp // tile_b,)

    def pad2(a, rows, cols, dtype):
        return jnp.pad(a.astype(dtype),
                       ((0, rows - a.shape[0]), (0, cols - a.shape[1])))

    # bf16 matmul operands (2x MXU throughput on v6e/v7x, half the weight VMEM /
    # HBM traffic everywhere); biases stay f32 and are added in the f32 accumulator.
    xp = pad2(x, Bp, Lp, compute_dtype)
    w1 = pad2(params["w1"], Lp, Hp, compute_dtype)
    w2 = pad2(params["w2"], Hp, Hp, compute_dtype)
    w3 = pad2(params["w3"], Hp, Ep, compute_dtype)
    b1 = pad2(params["b1"], 1, Hp, jnp.float32)
    b2 = pad2(params["b2"], 1, Hp, jnp.float32)
    b3 = pad2(params["b3"], 1, Ep, jnp.float32)

    # Rough resident-VMEM estimate (worst case: weights double-buffered if the
    # Buffered(1) request is unavailable).  Raise the scoped-VMEM limit only when
    # needed, capped at v7x's 64 MiB physical VMEM.
    csz = np.dtype(compute_dtype).itemsize
    osz = np.dtype(out_dtype).itemsize
    w_bytes = (Lp * Hp + Hp * Hp + Hp * Ep) * csz
    b_bytes = (2 * Hp + Ep) * 4
    io_bytes = 2 * tile_b * (Lp * csz + Ep * osz)       # double-buffered x / out tiles
    act_bytes = 4 * tile_b * Hp * 4                     # f32 intermediates headroom
    vmem_est = 2 * w_bytes + b_bytes + io_bytes + act_bytes

    compiler_kwargs = dict(dimension_semantics=("parallel",))
    if vmem_est > (24 << 20):
        compiler_kwargs["vmem_limit_bytes"] = int(min(vmem_est + (8 << 20), 64 << 20))

    out = pl.pallas_call(
        _mlp_kernel,
        out_shape=jax.ShapeDtypeStruct((Bp, Ep), out_dtype),
        grid_spec=pl.GridSpec(
            grid=grid,
            in_specs=[
                pl.BlockSpec((tile_b, Lp), lambda i: (i, 0)),   # x tile
                _resident_spec((Lp, Hp)),                        # w1 (full, resident)
                _resident_spec((1, Hp)),                         # b1
                _resident_spec((Hp, Hp)),                        # w2
                _resident_spec((1, Hp)),                         # b2
                _resident_spec((Hp, Ep)),                        # w3
                _resident_spec((1, Ep)),                         # b3
            ],
            out_specs=pl.BlockSpec((tile_b, Ep), lambda i: (i, 0)),
        ),
        compiler_params=pltpu.CompilerParams(**compiler_kwargs),
    )(xp, w1, b1, w2, b2, w3, b3)

    out = out[:B, :E]
    return out[0] if squeeze else out


def init_params(key, latent_dim, embedding_dim, hidden_dim):
    """Deterministic init mimicking nn.Linear defaults (uniform(-1/sqrt(fan_in), +))."""
    ks = jax.random.split(key, 6)

    def linear(kw, kb, fan_in, fan_out):
        bound = 1.0 / jnp.sqrt(fan_in)
        # stored already transposed: (in, out)
        w = jax.random.uniform(kw, (fan_in, fan_out), jnp.float32, -bound, bound)
        b = jax.random.uniform(kb, (1, fan_out), jnp.float32, -bound, bound)
        return w, b

    w1, b1 = linear(ks[0], ks[1], latent_dim, hidden_dim)
    w2, b2 = linear(ks[2], ks[3], hidden_dim, hidden_dim)
    w3, b3 = linear(ks[4], ks[5], hidden_dim, embedding_dim)
    return {"w1": w1, "b1": b1, "w2": w2, "b2": b2, "w3": w3, "b3": b3}


def _reference(x, p):
    squeeze = x.ndim == 1
    xb = x[None, :] if squeeze else x
    h = jnp.maximum(xb @ p["w1"] + p["b1"], 0.0)
    h = jnp.maximum(h @ p["w2"] + p["b2"], 0.0)
    o = h @ p["w3"] + p["b3"]
    return o[0] if squeeze else o


if __name__ == "__main__":
    latent_dim, embedding_dim, hidden_dim = 32, 32, 64
    batch = 2

    key = jax.random.PRNGKey(0)
    k_x, k_p = jax.random.split(key)

    params = init_params(k_p, latent_dim, embedding_dim, hidden_dim)
    x = jax.random.normal(k_x, (batch, latent_dim), jnp.float32)

    # Batched input (B, latent_dim)
    out = latent_feature_encoder(x, params)
    out = jax.block_until_ready(out)
    assert out.shape == (batch, embedding_dim), out.shape

    # Unbatched input (latent_dim,)
    out1 = latent_feature_encoder(x[0], params)
    out1 = jax.block_until_ready(out1)
    assert out1.shape == (embedding_dim,), out1.shape

    # Correctness check against f32 reference.  Matmul operands are bf16 with f32
    # accumulation, so tolerance is loosened accordingly.
    ref = _reference(x, params)
    assert jnp.allclose(out, ref, atol=5e-2, rtol=5e-2), "mismatch vs reference"
    assert jnp.allclose(out1, ref[0], atol=5e-2, rtol=5e-2), "mismatch vs reference (1-D)"

    print("KERNEL_OK")
</pallas_src>

<mosaic_0001>
module attributes {stable_mosaic.version = 11 : i64} {
  func.func @_mlp_kernel(%arg0: i32, %arg1: memref<16x128xbf16, #tpu.memory_space<vmem>>, %arg2: memref<128x128xbf16, #tpu.memory_space<vmem>>, %arg3: memref<1x128xf32, #tpu.memory_space<vmem>>, %arg4: memref<128x128xbf16, #tpu.memory_space<vmem>>, %arg5: memref<1x128xf32, #tpu.memory_space<vmem>>, %arg6: memref<128x128xbf16, #tpu.memory_space<vmem>>, %arg7: memref<1x128xf32, #tpu.memory_space<vmem>>, %arg8: memref<16x128xf32, #tpu.memory_space<vmem>>) attributes {dimension_semantics = [#tpu.dimension_semantics<parallel>], iteration_bounds = array<i64: 1>, scalar_prefetch = 0 : i64, scratch_operands = 0 : i64, tpu.core_type = #tpu.core_type<tc>, window_params = [{transform_indices = @transform_0, window_bounds = array<i64: 16, 128>}, {pipeline_mode = #tpu.pipeline_mode<synchronous>, transform_indices = @transform_1, window_bounds = array<i64: 128, 128>}, {pipeline_mode = #tpu.pipeline_mode<synchronous>, transform_indices = @transform_2, window_bounds = array<i64: 1, 128>}, {pipeline_mode = #tpu.pipeline_mode<synchronous>, transform_indices = @transform_3, window_bounds = array<i64: 128, 128>}, {pipeline_mode = #tpu.pipeline_mode<synchronous>, transform_indices = @transform_4, window_bounds = array<i64: 1, 128>}, {pipeline_mode = #tpu.pipeline_mode<synchronous>, transform_indices = @transform_5, window_bounds = array<i64: 128, 128>}, {pipeline_mode = #tpu.pipeline_mode<synchronous>, transform_indices = @transform_6, window_bounds = array<i64: 1, 128>}, {transform_indices = @transform_7, window_bounds = array<i64: 16, 128>}]} {
    %c0 = arith.constant 0 : index
    %c0_0 = arith.constant 0 : index
    %0 = vector.load %arg1[%c0, %c0_0] : memref<16x128xbf16, #tpu.memory_space<vmem>>, vector<16x128xbf16>
    %c0_1 = arith.constant 0 : index
    %c0_2 = arith.constant 0 : index
    %1 = vector.load %arg2[%c0_1, %c0_2] : memref<128x128xbf16, #tpu.memory_space<vmem>>, vector<128x128xbf16>
    %cst = arith.constant dense<0.000000e+00> : vector<16x128xf32>
    %2 = tpu.matmul %0, %1, %cst {dimension_numbers = #tpu.dot_dimension_numbers<[1], [0], [0], [1], [0, 0, 1, 1], [], []>} : vector<16x128xbf16>, vector<128x128xbf16>, vector<16x128xf32> -> vector<16x128xf32>
    %c0_3 = arith.constant 0 : index
    %c0_4 = arith.constant 0 : index
    %3 = vector.load %arg3[%c0_3, %c0_4] : memref<1x128xf32, #tpu.memory_space<vmem>>, vector<1x128xf32>
    %4 = vector.broadcast %3 : vector<1x128xf32> to vector<16x128xf32>
    %5 = arith.addf %2, %4 : vector<16x128xf32>
    %cst_5 = arith.constant 0.000000e+00 : f32
    %6 = vector.broadcast %cst_5 : f32 to vector<16x128xf32>
    %7 = arith.maximumf %5, %6 : vector<16x128xf32>
    %8 = arith.truncf %7 : vector<16x128xf32> to vector<16x128xbf16>
    %c0_6 = arith.constant 0 : index
    %c0_7 = arith.constant 0 : index
    %9 = vector.load %arg4[%c0_6, %c0_7] : memref<128x128xbf16, #tpu.memory_space<vmem>>, vector<128x128xbf16>
    %cst_8 = arith.constant dense<0.000000e+00> : vector<16x128xf32>
    %10 = tpu.matmul %8, %9, %cst_8 {dimension_numbers = #tpu.dot_dimension_numbers<[1], [0], [0], [1], [0, 0, 1, 1], [], []>} : vector<16x128xbf16>, vector<128x128xbf16>, vector<16x128xf32> -> vector<16x128xf32>
    %c0_9 = arith.constant 0 : index
    %c0_10 = arith.constant 0 : index
    %11 = vector.load %arg5[%c0_9, %c0_10] : memref<1x128xf32, #tpu.memory_space<vmem>>, vector<1x128xf32>
    %12 = vector.broadcast %11 : vector<1x128xf32> to vector<16x128xf32>
    %13 = arith.addf %10, %12 : vector<16x128xf32>
    %cst_11 = arith.constant 0.000000e+00 : f32
    %14 = vector.broadcast %cst_11 : f32 to vector<16x128xf32>
    %15 = arith.maximumf %13, %14 : vector<16x128xf32>
    %16 = arith.truncf %15 : vector<16x128xf32> to vector<16x128xbf16>
    %c0_12 = arith.constant 0 : index
    %c0_13 = arith.constant 0 : index
    %17 = vector.load %arg6[%c0_12, %c0_13] : memref<128x128xbf16, #tpu.memory_space<vmem>>, vector<128x128xbf16>
    %cst_14 = arith.constant dense<0.000000e+00> : vector<16x128xf32>
    %18 = tpu.matmul %16, %17, %cst_14 {dimension_numbers = #tpu.dot_dimension_numbers<[1], [0], [0], [1], [0, 0, 1, 1], [], []>} : vector<16x128xbf16>, vector<128x128xbf16>, vector<16x128xf32> -> vector<16x128xf32>
    %c0_15 = arith.constant 0 : index
    %c0_16 = arith.constant 0 : index
    %19 = vector.load %arg7[%c0_15, %c0_16] : memref<1x128xf32, #tpu.memory_space<vmem>>, vector<1x128xf32>
    %20 = vector.broadcast %19 : vector<1x128xf32> to vector<16x128xf32>
    %21 = arith.addf %18, %20 : vector<16x128xf32>
    %c0_17 = arith.constant 0 : index
    %c0_18 = arith.constant 0 : index
    %22 = vector.load %arg8[%c0_17, %c0_18] : memref<16x128xf32, #tpu.memory_space<vmem>>, vector<16x128xf32>
    tpu.vector_store %arg8[%c0_17, %c0_18], %21 {strides = array<i32>} : memref<16x128xf32, #tpu.memory_space<vmem>>, vector<16x128xf32>,
    return
  }
  func.func @transform_0(%arg0: i32) -> (i32, i32) {
    %c0_i32 = arith.constant 0 : i32
    %c0_i32_0 = arith.constant 0 : i32
    return %arg0, %c0_i32 : i32, i32
  }
  func.func @transform_1(%arg0: i32) -> (i32, i32) {
    %c0_i32 = arith.constant 0 : i32
    %c0_i32_0 = arith.constant 0 : i32
    %c0_i32_1 = arith.constant 0 : i32
    return %c0_i32, %c0_i32_0 : i32, i32
  }
  func.func @transform_2(%arg0: i32) -> (i32, i32) {
    %c0_i32 = arith.constant 0 : i32
    %c0_i32_0 = arith.constant 0 : i32
    %c0_i32_1 = arith.constant 0 : i32
    return %c0_i32, %c0_i32_0 : i32, i32
  }
  func.func @transform_3(%arg0: i32) -> (i32, i32) {
    %c0_i32 = arith.constant 0 : i32
    %c0_i32_0 = arith.constant 0 : i32
    %c0_i32_1 = arith.constant 0 : i32
    return %c0_i32, %c0_i32_0 : i32, i32
  }
  func.func @transform_4(%arg0: i32) -> (i32, i32) {
    %c0_i32 = arith.constant 0 : i32
    %c0_i32_0 = arith.constant 0 : i32
    %c0_i32_1 = arith.constant 0 : i32
    return %c0_i32, %c0_i32_0 : i32, i32
  }
  func.func @transform_5(%arg0: i32) -> (i32, i32) {
    %c0_i32 = arith.constant 0 : i32
    %c0_i32_0 = arith.constant 0 : i32
    %c0_i32_1 = arith.constant 0 : i32
    return %c0_i32, %c0_i32_0 : i32, i32
  }
  func.func @transform_6(%arg0: i32) -> (i32, i32) {
    %c0_i32 = arith.constant 0 : i32
    %c0_i32_0 = arith.constant 0 : i32
    %c0_i32_1 = arith.constant 0 : i32
    return %c0_i32, %c0_i32_0 : i32, i32
  }
  func.func @transform_7(%arg0: i32) -> (i32, i32) {
    %c0_i32 = arith.constant 0 : i32
    %c0_i32_0 = arith.constant 0 : i32
    return %arg0, %c0_i32 : i32, i32
  }
}

</mosaic_0001>

<bundles_post_ra>
// kernel: latent_feature_encoder.1
= control target key start
LH: loop header
LB: loop body
LE: loop exit
PB: predicated region body
PF: predicated region fallthrough
CT: control target
= control target key end

     0   :  { %v525_v0 = vmov 0.0   ;;  %vm526_vm0 = vmmov 0   ;;  %s687_s1 = inlined_call_operand.vmem [shape: bf16[128,128], index: 1, kind: input, shape index: {}]   ;;  %s688_s3 = inlined_call_operand.vmem [shape: bf16[128,128], index: 3, kind: input, shape index: {}]   ;;  %s689_s0 = inlined_call_operand.vmem [shape: bf16[16,128], index: 0, kind: input, shape index: {}]   ;;  %s690_s5 = inlined_call_operand.vmem [shape: bf16[128,128], index: 5, kind: input, shape index: {}]   ;;  %s691_s2 = inlined_call_operand.vmem [shape: f32[1,128], index: 2, kind: input, shape index: {}]   ;;  %s692_s4 = inlined_call_operand.vmem [shape: f32[1,128], index: 4, kind: input, shape index: {}]   ;;  %s693_s6 = inlined_call_operand.vmem [shape: f32[1,128], index: 6, kind: input, shape index: {}]   ;;  %s694_s7 = inlined_call_operand.vmem [shape: f32[16,128], index: 7, kind: output, shape index: {}]  }
   0x1   :  { %438 = vmatprep.subr.bf16.mxu0 %v525_v0  ;;  %v500_v1 = vld [vmem:[%s687_s1] sm:$0xff]   ;;  %454 = vmatprep.mubr.msk.bf16.mxu0 %vm526_vm0, %v525_v0  ;;  %v501_v2 = vld [vmem:[%s687_s1 + $0x8] sm:$0xff]   ;;  %v502_v3 = vld [vmem:[%s687_s1 + $0x10] sm:$0xff]  }
   0x2   :  { %458 = vmatprep.subr.bf16.mxu1 %v525_v0  ;;  %474 = vmatprep.mubr.msk.bf16.mxu1 %vm526_vm0, %v525_v0  ;;  %v509_v4 = vld [vmem:[%s688_s3] sm:$0xff]   ;;  %v503_v5 = vld [vmem:[%s687_s1 + $0x18] sm:$0xff]   ;;  %v510_v6 = vld [vmem:[%s688_s3 + $0x8] sm:$0xff]  }
   0x3   :  { %439 = vmatpush3.bf16.msra.mxu0 %v500_v1  ;;  %459 = vmatpush3.bf16.msra.mxu1 %v509_v4  ;;  %v504_v7 = vld [vmem:[%s687_s1 + $0x20] sm:$0xff]   ;;  %v511_v8 = vld [vmem:[%s688_s3 + $0x10] sm:$0xff]   ;;  %v505_v9 = vld [vmem:[%s687_s1 + $0x28] sm:$0xff]  }
   0x4   :  { %440 = vmatprep.subr.bf16.mxu0 %v525_v0  ;;  %460 = vmatprep.subr.bf16.mxu1 %v525_v0  ;;  %v512_v10 = vld [vmem:[%s688_s3 + $0x18] sm:$0xff]   ;;  %v506_v11 = vld [vmem:[%s687_s1 + $0x30] sm:$0xff]   ;;  %v513_v12 = vld [vmem:[%s688_s3 + $0x20] sm:$0xff]  }
   0x5   :  { %v507_v13 = vld [vmem:[%s687_s1 + $0x38] sm:$0xff]   ;;  %v514_v14 = vld [vmem:[%s688_s3 + $0x28] sm:$0xff]   ;;  %v508_v15 = vld [vmem:[%s689_s0] sm:$0xff]  }
   0x6   :  { %v515_v16 = vld [vmem:[%s688_s3 + $0x30] sm:$0xff]   ;;  %v516_v17 = vld [vmem:[%s688_s3 + $0x38] sm:$0xff]   ;;  %v517_v18 = vld [vmem:[%s690_s5] sm:$0xff]  }
   0x7   :  { %441 = vmatpush3.bf16.msra.mxu0 %v501_v2  ;;  %461 = vmatpush3.bf16.msra.mxu1 %v510_v6  ;;  %v518_v19 = vld [vmem:[%s690_s5 + $0x8] sm:$0xff]   ;;  %v519_v20 = vld [vmem:[%s690_s5 + $0x10] sm:$0xff]   ;;  %v520_v21 = vld [vmem:[%s690_s5 + $0x18] sm:$0xff]  }
   0x8   :  { %442 = vmatprep.subr.bf16.mxu0 %v525_v0  ;;  %462 = vmatprep.subr.bf16.mxu1 %v525_v0  ;;  %v521_v22 = vld [vmem:[%s690_s5 + $0x20] sm:$0xff]   ;;  %v522_v23 = vld [vmem:[%s690_s5 + $0x28] sm:$0xff]   ;;  %v523_v34 = vld [vmem:[%s690_s5 + $0x30] sm:$0xff]  }
   0x9   :  { %v383_v24 = vld [vmem:[%s691_s2] ss:$0 sm:$0xff]  ;;  %v524_v35 = vld [vmem:[%s690_s5 + $0x38] sm:$0xff]  }
   0xa   :  { %v393_v36 = vld [vmem:[%s692_s4] ss:$0 sm:$0xff] }
   0xb   :  { %443 = vmatpush3.bf16.msra.mxu0 %v502_v3  ;;  %463 = vmatpush3.bf16.msra.mxu1 %v511_v8  ;;  %v402_v46 = vld [vmem:[%s693_s6] ss:$0 sm:$0xff] }
   0xc   :  { %444 = vmatprep.subr.bf16.mxu0 %v525_v0  ;;  %464 = vmatprep.subr.bf16.mxu1 %v525_v0 }
   0xf   :  { %445 = vmatpush3.bf16.msra.mxu0 %v503_v5  ;;  %465 = vmatpush3.bf16.msra.mxu1 %v512_v10 }
  0x10   :  { %446 = vmatprep.subr.bf16.mxu0 %v525_v0  ;;  %466 = vmatprep.subr.bf16.mxu1 %v525_v0 }
  0x13   :  { %447 = vmatpush3.bf16.msra.mxu0 %v504_v7  ;;  %467 = vmatpush3.bf16.msra.mxu1 %v513_v12 }
  0x14   :  { %448 = vmatprep.subr.bf16.mxu0 %v525_v0  ;;  %468 = vmatprep.subr.bf16.mxu1 %v525_v0 }
  0x17   :  { %449 = vmatpush3.bf16.msra.mxu0 %v505_v9  ;;  %469 = vmatpush3.bf16.msra.mxu1 %v514_v14 }
  0x18   :  { %450 = vmatprep.subr.bf16.mxu0 %v525_v0  ;;  %470 = vmatprep.subr.bf16.mxu1 %v525_v0 }
  0x1b   :  { %451 = vmatpush3.bf16.msra.mxu0 %v506_v11  ;;  %471 = vmatpush3.bf16.msra.mxu1 %v515_v16 }
  0x1c   :  { %452 = vmatprep.subr.bf16.mxu0 %v525_v0  ;;  %472 = vmatprep.subr.bf16.mxu1 %v525_v0 }
  0x1f   :  { %453 = vmatpush3.bf16.msra.mxu0 %v507_v13  ;;  %473 = vmatpush3.bf16.msra.mxu1 %v516_v17 }
  0x20   :  { %478 = vmatprep.subr.bf16.mxu0 %v525_v0 }
  0x22   :  { %455 = vmatmul.mubr.bf16.vlgmr.msra.gmra.mrb[0].mxu0 %v508_v15 }
  0x23   :  { %494 = vmatprep.mubr.msk.bf16.mxu0 %vm526_vm0, %v525_v0  ;;  %479 = vmatpush3.bf16.msra.mxu0 %v517_v18 }
  0x24   :  { %480 = vmatprep.subr.bf16.mxu0 %v525_v0 }
  0x27   :  { %481 = vmatpush3.bf16.msra.mxu0 %v518_v19 }
  0x28   :  { %482 = vmatprep.subr.bf16.mxu0 %v525_v0 }
  0x2b   :  { %483 = vmatpush3.bf16.msra.mxu0 %v519_v20 }
  0x2c   :  { %484 = vmatprep.subr.bf16.mxu0 %v525_v0 }
  0x2f   :  { %485 = vmatpush3.bf16.msra.mxu0 %v520_v21 }
  0x30   :  { %486 = vmatprep.subr.bf16.mxu0 %v525_v0 }
  0x33   :  { %487 = vmatpush3.bf16.msra.mxu0 %v521_v22 }
  0x34   :  { %488 = vmatprep.subr.bf16.mxu0 %v525_v0 }
  0x37   :  { %489 = vmatpush3.bf16.msra.mxu0 %v522_v23 }
  0x38   :  { %490 = vmatprep.subr.bf16.mxu0 %v525_v0 }
  0x3b   :  { %491 = vmatpush3.bf16.msra.mxu0 %v523_v34 }
  0x3c   :  { %492 = vmatprep.subr.bf16.mxu0 %v525_v0 }
  0x3f   :  { %493 = vmatpush3.bf16.msra.mxu0 %v524_v35 }
  0xf5   :  { %v140_v25 = vpop.f32.mrb[0].mxu0 }
  0xf6   :  { %v141_v26 = vadd.f32 %v383_v24, %v140_v25  ;;  %v456_v27 = vpop.f32.mrb[1].mxu0 }
  0xf7   :  { %v143_v28 = vpop.f32.mrb[2].mxu0 }
  0xf8   :  { %v144_v29 = vadd.f32 %v383_v24, %v143_v28  ;;  %v457_v30 = vpop.f32.mrb[3].mxu0  ;;  %v147_v31 = vmax.f32 %v141_v26, 0.0 }
  0xfa   :  { %v148_v32 = vmax.f32 %v144_v29, 0.0 }
  0xfc   :  { %v149_v33 = vpack.c.bf16 %v148_v32, %v147_v31 }
  0xfe   :  { %475 = vmatmul.mubr.bf16.vlgmr.msra.gmra.mrb[0].mxu1 %v149_v33 }
 0x1d1   :  { %v255_v37 = vpop.f32.mrb[0].mxu1 }
 0x1d2   :  { %v256_v38 = vadd.f32 %v393_v36, %v255_v37  ;;  %v476_v39 = vpop.f32.mrb[1].mxu1 }
 0x1d3   :  { %v258_v40 = vpop.f32.mrb[2].mxu1 }
 0x1d4   :  { %v259_v41 = vadd.f32 %v393_v36, %v258_v40  ;;  %v477_v42 = vpop.f32.mrb[3].mxu1  ;;  %v262_v43 = vmax.f32 %v256_v38, 0.0 }
 0x1d6   :  { %v263_v44 = vmax.f32 %v259_v41, 0.0 }
 0x1d8   :  { %v264_v45 = vpack.c.bf16 %v263_v44, %v262_v43 }
 0x1da   :  { %495 = vmatmul.mubr.bf16.vlgmr.msra.gmra.mrb[4].mxu0 %v264_v45 }
 0x2ad   :  { %v370_v47 = vpop.f32.mrb[4].mxu0 }
 0x2ae   :  { %v371_v48 = vadd.f32 %v402_v46, %v370_v47  ;;  %v496_v49 = vpop.f32.mrb[5].mxu0 }
 0x2af   :  { %v373_v50 = vpop.f32.mrb[6].mxu0 }
 0x2b0   :  { %377 = vst [vmem:[%s694_s7] sm:$0xff] %v371_v48  ;;  %v374_v51 = vadd.f32 %v402_v46, %v373_v50  ;;  %v497_v52 = vpop.f32.mrb[7].mxu0 }
 0x2b2   :  { %378 = vst [vmem:[%s694_s7 + $0x8] sm:$0xff] %v374_v51 }

</bundles_post_ra>
